<compile_context>
chip_gen: v5e
topology: v5e:2x2
jax: 0.10.0
libtpu: 0.0.40
codegen_flags: <defaults>
</compile_context>

<pallas_src>
import functools

import jax
import jax.numpy as jnp
from jax.experimental import pallas as pl
from jax.experimental.pallas import tpu as pltpu

_LANE = 128


def _round_up(x: int, m: int) -> int:
    return ((x + m - 1) // m) * m


def _vmem_caps():
    """(budget_for_resident_set, physical_capacity) in bytes, chip-aware."""
    try:
        phys = int(pltpu.get_tpu_info().vmem_capacity_bytes)
    except Exception:
        phys = 64 << 20                       # conservative (v7x-sized) fallback
    # ~25% headroom for compiler scratch / spills; cap the budget at 96 MiB.
    budget = max(16 << 20, min(int(0.75 * phys), 96 << 20))
    return budget, phys


def _resident_bytes(B: int, tn: int, tk: int, dtype_bytes: int,
                    with_acc: bool) -> int:
    """Full VMEM resident set: double-buffered x/weight/out/params (+ f32 acc)."""
    r = dtype_bytes * (2 * B * tk      # x
                       + 2 * tk * tn   # weight tile
                       + 2 * B * tn    # output tile
                       + 2 * 3 * tn)   # packed bias/gamma/beta
    if with_acc:
        r += 4 * B * tn                # f32 accumulator scratch
    return r


def _choose_tiling(B: int, in_f: int, out_p: int, dtype_bytes: int,
                   budget: int):
    """Pick (tn, tk) so the full resident set fits the chip-aware budget."""
    tn_candidates = [t for t in range(_LANE, min(out_p, 512) + 1, _LANE)
                     if out_p % t == 0]
    tn = _LANE
    for t in tn_candidates:
        if _resident_bytes(B, t, min(in_f, _LANE), dtype_bytes, True) <= budget:
            tn = t
    # Feed both TensorCores on megacore parts: prefer grid_n >= 2.
    while out_p // tn < 2 and tn > _LANE:
        smaller = [t for t in tn_candidates if t < tn]
        if not smaller:
            break
        tn = smaller[-1]

    # Whole-K block if it fits (no accumulator round-trip)...
    if _resident_bytes(B, tn, in_f, dtype_bytes, False) <= budget:
        return tn, in_f
    # ...otherwise K-tile with a multiple-of-128 chunk that divides in_f.
    if in_f % _LANE == 0:
        tk = _LANE
        t = 2 * _LANE
        while t <= in_f:
            if in_f % t == 0 and _resident_bytes(B, tn, t, dtype_bytes,
                                                 True) <= budget:
                tk = t
            t += _LANE
        return tn, tk
    # Unaligned oversized in_f: fall back to a single K block (rare; pad
    # in_features at model-definition time to enable K-tiling).
    return tn, in_f


def _finalize(y, p_ref, apply_bn: bool, use_activation: bool, eps: float):
    """BN (training-mode batch stats) or bias, then optional ReLU.  y is f32."""
    if apply_bn:
        # Linear bias is cancelled exactly by the BN mean subtraction -> skipped.
        gamma = p_ref[1:2, :]                       # (1, TN)
        beta = p_ref[2:3, :]                        # (1, TN)
        inv_n = 1.0 / y.shape[0]
        mean = jnp.sum(y, axis=0, keepdims=True) * inv_n
        centered = y - mean                         # two-pass variance (safe)
        var = jnp.sum(centered * centered, axis=0, keepdims=True) * inv_n
        scale = gamma * jax.lax.rsqrt(var + eps)
        y = centered * scale + beta
    else:
        y = y + p_ref[0:1, :]                       # bias only (batch == 1)
    if use_activation:
        y = jnp.maximum(y, 0.0)
    return y


def _dense_linear_bn_kernel(x_ref, w_ref, p_ref, o_ref, *scratch,
                            apply_bn: bool, use_activation: bool, eps: float,
                            precision, single_k: bool):
    if single_k:
        # Single K block: compute and finalize directly, no accumulator.
        y = jnp.dot(x_ref[...], w_ref[...],
                    preferred_element_type=jnp.float32, precision=precision)
        o_ref[...] = _finalize(y, p_ref, apply_bn, use_activation,
                               eps).astype(o_ref.dtype)
        return

    acc_ref, = scratch
    k = pl.program_id(1)

    @pl.when(k == 0)
    def _():
        acc_ref[...] = jnp.zeros_like(acc_ref)

    acc_ref[...] += jnp.dot(x_ref[...], w_ref[...],
                            preferred_element_type=jnp.float32,
                            precision=precision)

    @pl.when(k == pl.num_programs(1) - 1)
    def _():
        o_ref[...] = _finalize(acc_ref[...], p_ref, apply_bn, use_activation,
                               eps).astype(o_ref.dtype)


def prepare_dense_linear_bn_params(weight, bias, gamma, beta):
    """One-time parameter prep (call at load time, NOT per forward call).

    Transposes the PyTorch (out_f, in_f) weight to (in_f, out_f) so the MXU RHS
    is (K-sublane, N-lane), and lane-pads out_features to a multiple of 128.
    Padded columns have weight=bias=gamma=beta=0 and are sliced off by the
    wrapper; BN stats are per-feature so they never contaminate valid columns.
    """
    out_f, _ = weight.shape
    out_p = _round_up(out_f, _LANE)
    w_t = jnp.asarray(weight).T                              # (in_f, out_f)
    params = jnp.stack([jnp.asarray(bias), jnp.asarray(gamma),
                        jnp.asarray(beta)], axis=0)          # (3, out_f)
    if out_p != out_f:
        w_t = jnp.pad(w_t, ((0, 0), (0, out_p - out_f)))
        params = jnp.pad(params, ((0, 0), (0, out_p - out_f)))
    return w_t, params


def dense_linear_bn(x, w_t, params, *, out_features=None, use_activation=True,
                    eps=1e-5, precision=jax.lax.Precision.HIGHEST):
    """Forward pass of DenseLinearBN on prepared parameters.

    Args:
      x:            (B, in_features) float32
      w_t:          (in_features, out_p) weight from prepare_dense_linear_bn_params
      params:       (3, out_p) packed [bias; gamma; beta]
      out_features: true out_features (<= out_p); output is sliced to it.
      precision:    explicit matmul precision (HIGHEST = f32 fidelity; use
                    DEFAULT / bf16 weights when bandwidth matters more).
    Returns:
      (B, out_features) in x.dtype.
    """
    B, in_f = x.shape
    in_w, out_p = w_t.shape
    assert in_w == in_f, "x / weight in_features mismatch"
    if out_features is None:
        out_features = out_p

    # BN only when batch size > 1 (static, matches the module's guard).
    apply_bn = B > 1

    dtype_bytes = jnp.dtype(x.dtype).itemsize
    budget, phys = _vmem_caps()
    tn, tk = _choose_tiling(B, in_f, out_p, dtype_bytes, budget)
    grid_n = out_p // tn
    grid_k = in_f // tk if tk < in_f else 1
    single_k = grid_k == 1

    resident = _resident_bytes(B, tn, tk, dtype_bytes, not single_k)
    vmem_limit = int(min(max(budget, resident + (4 << 20)),
                         max(32 << 20, phys)))
    vmem_limit = max(32 << 20, min(vmem_limit, phys))

    kernel = functools.partial(
        _dense_linear_bn_kernel,
        apply_bn=apply_bn,
        use_activation=use_activation,
        eps=eps,
        precision=precision,
        single_k=single_k,
    )

    # x is DMA'd once when there is a single K block (constant block index);
    # with K-tiling it is re-fetched once per N tile.
    x_bytes = dtype_bytes * B * in_f * (1 if single_k else grid_n)
    cost = pl.CostEstimate(
        flops=2 * B * in_f * out_p,
        transcendentals=out_p if apply_bn else 0,
        bytes_accessed=(x_bytes
                        + dtype_bytes * (in_f * out_p + 3 * out_p + B * out_p)),
    )

    scratch_shapes = [] if single_k else [pltpu.VMEM((B, tn), jnp.float32)]

    out = pl.pallas_call(
        kernel,
        out_shape=jax.ShapeDtypeStruct((B, out_p), x.dtype),
        grid=(grid_n, grid_k),
        in_specs=[
            pl.BlockSpec((B, tk), lambda j, k: (0, k)),     # x
            pl.BlockSpec((tk, tn), lambda j, k: (k, j)),    # weight (K, N) -> MXU RHS
            pl.BlockSpec((3, tn), lambda j, k: (0, j)),     # packed bias/gamma/beta
        ],
        out_specs=pl.BlockSpec((B, tn), lambda j, k: (0, j)),
        scratch_shapes=scratch_shapes,
        compiler_params=pltpu.CompilerParams(
            dimension_semantics=("parallel", "arbitrary"),
            vmem_limit_bytes=vmem_limit,
        ),
        cost_estimate=cost,
    )(x, w_t, params)

    if out_p != out_features:
        out = out[:, :out_features]
    return out


def _reference(x, weight, bias, gamma, beta, use_activation=True, eps=1e-5):
    y = jnp.dot(x, weight.T, precision=jax.lax.Precision.HIGHEST) + bias
    if x.shape[0] > 1:
        mean = jnp.mean(y, axis=0, keepdims=True)
        var = jnp.mean((y - mean) ** 2, axis=0, keepdims=True)
        y = (y - mean) / jnp.sqrt(var + eps) * gamma + beta
    if use_activation:
        y = jnp.maximum(y, 0.0)
    return y


if __name__ == "__main__":
    batch = 8
    in_channels = 32
    out_channels = 64
    use_activation = True

    key = jax.random.PRNGKey(0)
    kx, kw, kb = jax.random.split(key, 3)

    x = jax.random.normal(kx, (batch, in_channels), dtype=jnp.float32)

    # Deterministic parameter init (mimicking nn.Linear's uniform fan-in init).
    bound = 1.0 / (in_channels ** 0.5)
    weight = jax.random.uniform(kw, (out_channels, in_channels),
                                minval=-bound, maxval=bound, dtype=jnp.float32)
    bias = jax.random.uniform(kb, (out_channels,), minval=-bound,
                              maxval=bound, dtype=jnp.float32)
    # BatchNorm1d default init: weight=1, bias=0.
    gamma = jnp.ones((out_channels,), dtype=jnp.float32)
    beta = jnp.zeros((out_channels,), dtype=jnp.float32)

    # One-time parameter prep (transpose + lane padding), outside the hot path.
    w_t, params = prepare_dense_linear_bn_params(weight, bias, gamma, beta)

    out = dense_linear_bn(x, w_t, params, out_features=out_channels,
                          use_activation=use_activation)
    out = jax.block_until_ready(out)

    ref = _reference(x, weight, bias, gamma, beta,
                     use_activation=use_activation)
    assert out.shape == (batch, out_channels)
    assert jnp.allclose(out, ref, atol=1e-4, rtol=1e-4), "mismatch vs reference"

    print("KERNEL_OK")
</pallas_src>

<mosaic_0001>
module attributes {stable_mosaic.version = 11 : i64} {
  func.func @_dense_linear_bn_kernel(%arg0: i32, %arg1: i32, %arg2: memref<8x32xf32, #tpu.memory_space<vmem>>, %arg3: memref<32x128xf32, #tpu.memory_space<vmem>>, %arg4: memref<3x128xf32, #tpu.memory_space<vmem>>, %arg5: memref<8x128xf32, #tpu.memory_space<vmem>>) attributes {dimension_semantics = [#tpu.dimension_semantics<parallel>, #tpu.dimension_semantics<arbitrary>], iteration_bounds = array<i64: 1, 1>, scalar_prefetch = 0 : i64, scratch_operands = 0 : i64, tpu.core_type = #tpu.core_type<tc>, window_params = [{transform_indices = @transform_0, window_bounds = array<i64: 8, 32>}, {transform_indices = @transform_1, window_bounds = array<i64: 32, 128>}, {transform_indices = @transform_2, window_bounds = array<i64: 3, 128>}, {transform_indices = @transform_3, window_bounds = array<i64: 8, 128>}]} {
    %c0 = arith.constant 0 : index
    %c0_0 = arith.constant 0 : index
    %0 = vector.load %arg2[%c0, %c0_0] : memref<8x32xf32, #tpu.memory_space<vmem>>, vector<8x32xf32>
    %c0_1 = arith.constant 0 : index
    %c0_2 = arith.constant 0 : index
    %1 = vector.load %arg3[%c0_1, %c0_2] : memref<32x128xf32, #tpu.memory_space<vmem>>, vector<32x128xf32>
    %cst = arith.constant dense<0.000000e+00> : vector<8x128xf32>
    %2 = tpu.matmul %0, %1, %cst {dimension_numbers = #tpu.dot_dimension_numbers<[1], [0], [0], [1], [0, 0, 1, 1], [], []>, precision = #tpu.contract_precision<fp32>} : vector<8x32xf32>, vector<32x128xf32>, vector<8x128xf32> -> vector<8x128xf32>
    %c1 = arith.constant 1 : index
    %c0_3 = arith.constant 0 : index
    %3 = vector.load %arg4[%c1, %c0_3] : memref<3x128xf32, #tpu.memory_space<vmem>>, vector<1x128xf32>
    %c2 = arith.constant 2 : index
    %c0_4 = arith.constant 0 : index
    %4 = vector.load %arg4[%c2, %c0_4] : memref<3x128xf32, #tpu.memory_space<vmem>>, vector<1x128xf32>
    %cst_5 = arith.constant dense<0.000000e+00> : vector<128xf32>
    %5 = vector.multi_reduction <add>, %2, %cst_5 [0] : vector<8x128xf32> to vector<128xf32>
    %6 = vector.shape_cast %5 : vector<128xf32> to vector<1x128xf32>
    %cst_6 = arith.constant 1.250000e-01 : f32
    %7 = vector.broadcast %cst_6 : f32 to vector<1x128xf32>
    %8 = arith.mulf %6, %7 : vector<1x128xf32>
    %9 = vector.broadcast %8 : vector<1x128xf32> to vector<8x128xf32>
    %10 = arith.subf %2, %9 : vector<8x128xf32>
    %11 = arith.mulf %10, %10 : vector<8x128xf32>
    %cst_7 = arith.constant dense<0.000000e+00> : vector<128xf32>
    %12 = vector.multi_reduction <add>, %11, %cst_7 [0] : vector<8x128xf32> to vector<128xf32>
    %13 = vector.shape_cast %12 : vector<128xf32> to vector<1x128xf32>
    %cst_8 = arith.constant 1.250000e-01 : f32
    %14 = vector.broadcast %cst_8 : f32 to vector<1x128xf32>
    %15 = arith.mulf %13, %14 : vector<1x128xf32>
    %cst_9 = arith.constant 9.99999974E-6 : f32
    %16 = vector.broadcast %cst_9 : f32 to vector<1x128xf32>
    %17 = arith.addf %15, %16 : vector<1x128xf32>
    %18 = math.rsqrt %17 : vector<1x128xf32>
    %19 = arith.mulf %3, %18 : vector<1x128xf32>
    %20 = vector.broadcast %19 : vector<1x128xf32> to vector<8x128xf32>
    %21 = arith.mulf %10, %20 : vector<8x128xf32>
    %22 = vector.broadcast %4 : vector<1x128xf32> to vector<8x128xf32>
    %23 = arith.addf %21, %22 : vector<8x128xf32>
    %cst_10 = arith.constant 0.000000e+00 : f32
    %24 = vector.broadcast %cst_10 : f32 to vector<8x128xf32>
    %25 = arith.maximumf %23, %24 : vector<8x128xf32>
    %c0_11 = arith.constant 0 : index
    %c0_12 = arith.constant 0 : index
    %26 = vector.load %arg5[%c0_11, %c0_12] : memref<8x128xf32, #tpu.memory_space<vmem>>, vector<8x128xf32>
    tpu.vector_store %arg5[%c0_11, %c0_12], %25 {strides = array<i32>} : memref<8x128xf32, #tpu.memory_space<vmem>>, vector<8x128xf32>,
    return
  }
  func.func @transform_0(%arg0: i32, %arg1: i32) -> (i32, i32) {
    %c0_i32 = arith.constant 0 : i32
    %c0_i32_0 = arith.constant 0 : i32
    return %c0_i32, %arg1 : i32, i32
  }
  func.func @transform_1(%arg0: i32, %arg1: i32) -> (i32, i32) {
    %c0_i32 = arith.constant 0 : i32
    return %arg1, %arg0 : i32, i32
  }
  func.func @transform_2(%arg0: i32, %arg1: i32) -> (i32, i32) {
    %c0_i32 = arith.constant 0 : i32
    %c0_i32_0 = arith.constant 0 : i32
    return %c0_i32, %arg0 : i32, i32
  }
  func.func @transform_3(%arg0: i32, %arg1: i32) -> (i32, i32) {
    %c0_i32 = arith.constant 0 : i32
    %c0_i32_0 = arith.constant 0 : i32
    return %c0_i32, %arg0 : i32, i32
  }
}

</mosaic_0001>

<bundles_post_ra>
// kernel: tpu_custom_call.1
= control target key start
LH: loop header
LB: loop body
LE: loop exit
PB: predicated region body
PF: predicated region fallthrough
CT: control target
= control target key end

     0   :  { %8 = vsyncpa [#allocation3], 0  ;;  %s455_s0 = inlined_call_operand.hbm [shape: f32[8,32], index: 0, kind: input, shape index: {}]   ;;  %s456_s1 = inlined_call_operand.hbm [shape: f32[32,128], index: 1, kind: input, shape index: {}]   ;;  %s457_s2 = inlined_call_operand.hbm [shape: f32[3,128], index: 2, kind: input, shape index: {}]   ;;  %s458_s3 = inlined_call_operand.hbm [shape: f32[8,128], index: 3, kind: output, shape index: {}]  }
   0x1   :  { %9 = vsyncpa [#allocation6], 0  ;;  %s26_s14 = sshll.u32 %s456_s1, 4  ;;  %s27_s14 = int_to_ptr.hbm [resolvable:$true] %s26_s14 }
   0x2   :  { %10 = vsyncpa [#allocation4], 0  ;;  %s417_s15 = smov [#allocation5]   ;;  %s16_s19 = sshll.u32 %s455_s0, 4  ;;  %s17_s19 = int_to_ptr.hbm [resolvable:$true] %s16_s19 }
   0x3   :  { %s28_s16 = sshll.u32 %s417_s15, 4  ;;  %s418_s20 = smov 128   ;;  %s29_s16 = int_to_ptr.vmem [resolvable:$true] %s28_s16 }
   0x4   :  { %s419_s21 = smov 8   ;;  %s420_s22 = smov [#allocation2]  }
   0x5   :  { %34 = dma.hbm_to_vmem [thread:$0]  %s27_s14, 512, %s29_s16, [#allocation6], %s418_s20, %s418_s20, %s419_s21  }
   0x6   :  { %s18_s23 = sshll.u32 %s420_s22, 4  ;;  %s40_s26 = sshll.u32 %s457_s2, 4  ;;  %s19_s23 = int_to_ptr.vmem [resolvable:$true] %s18_s23  ;;  %s41_s26 = int_to_ptr.hbm [resolvable:$true] %s40_s26 }
   0x7   :  { %21 = dma.hbm_to_vmem [thread:$0]  %s17_s19, 128, %s19_s23, [#allocation3]  }
   0x8   :  { %s421_s1 = smov [#allocation7]  }
   0x9   :  { %s42_s27 = sshll.u32 %s421_s1, 4  ;;  %s43_s27 = int_to_ptr.vmem [resolvable:$true] %s42_s27 }
   0xa   :  { %45 = dma.hbm_to_vmem [thread:$0]  %s41_s26, 64, %s43_s27, [#allocation6]  }
   0xb   :  { %411 = dma.done.wait [#allocation3], 128  }
   0xc   :  { %412 = vsyncadd [#allocation3], 4294967168 }
   0xd   :  { %413 = dma.done.wait [#allocation6], 576  }
   0xe   :  { %414 = vsyncadd [#allocation6], 4294966720  ;;  %vm63_vm0 = vcmask 261120   ;;  %v62_v0 = vld [vmem:[#allocation5 + $0x18] sm:$0xff]  ;;  %v61_v1 = vld [vmem:[#allocation5 + $0x10] sm:$0xff]  ;;  %s422_s0 = smov [#allocation8]  }
   0xf   :  { %v60_v2 = vld [vmem:[#allocation5 + $0x8] sm:$0xff]  ;;  %v79_v3 = vand.u32 4294901760, %v62_v0  ;;  %v81_v4 = vand.u32 4294901760, %v61_v1  ;;  %v59_v6 = vld [vmem:[#allocation5] sm:$0xff]  ;;  %v58_v7 = vld [vmem:[#allocation2] sm:$0xff]  ;;  %s293_s2 = sshll.u32 %s422_s0, 4  ;;  %s294_s2 = int_to_ptr.vmem [resolvable:$true] %s293_s2 }
  0x10   :  { %v83_v5 = vand.u32 4294901760, %v60_v2  ;;  %v85_v8 = vand.u32 4294901760, %v59_v6  ;;  %v65_v9 = vsel %vm63_vm0, %v58_v7, 0  ;;  %s295_s30 = sshll.u32 %s458_s3, 4  ;;  %s296_s30 = int_to_ptr.hbm [resolvable:$true] %s295_s30 }
  0x11   :  { %v109_v10 = vsub.f32 %v62_v0, %v79_v3  ;;  %80 = vmatpush.msra.mxu0 %v79_v3  ;;  %v115_v11 = vsub.f32 %v61_v1, %v81_v4  ;;  %180 = vmatpush.msra.mxu3 %v79_v3  ;;  %v87_v13 = vand.u32 4294901760, %v65_v9  ;;  %v252_v0 = vld [vmem:[#allocation7 + $0x1] sm:$0x1] }
  0x12   :  { %v121_v12 = vsub.f32 %v60_v2, %v83_v5  ;;  %v127_v14 = vsub.f32 %v59_v6, %v85_v8 }
  0x13   :  { %151 = vmatpush.msra.mxu2 %v109_v10  ;;  %82 = vmatpush.msra.mxu0 %v81_v4  ;;  %v110_v15 = vand.u32 4294901760, %v109_v10  ;;  %v116_v16 = vand.u32 4294901760, %v115_v11  ;;  %v88_v17 = vsub.f32 %v65_v9, %v87_v13 }
  0x14   :  { %v122_v18 = vand.u32 4294901760, %v121_v12  ;;  %182 = vmatpush.msra.mxu3 %v81_v4  ;;  %v128_v19 = vand.u32 4294901760, %v127_v14 }
  0x15   :  { %154 = vmatpush.msra.mxu2 %v115_v11  ;;  %v111_v20 = vsub.f32 %v109_v10, %v110_v15  ;;  %84 = vmatpush.msra.mxu0 %v83_v5  ;;  %v117_v21 = vsub.f32 %v115_v11, %v116_v16  ;;  %v89_v23 = vand.u32 4294901760, %v88_v17 }
  0x16   :  { %v123_v22 = vsub.f32 %v121_v12, %v122_v18  ;;  %184 = vmatpush.msra.mxu3 %v83_v5  ;;  %v129_v27 = vsub.f32 %v127_v14, %v128_v19 }
  0x17   :  { %v112_v24 = vand.u32 4294901760, %v111_v20  ;;  %157 = vmatpush.msra.mxu2 %v121_v12  ;;  %v118_v25 = vand.u32 4294901760, %v117_v21  ;;  %86 = vmatpush.msra.mxu0 %v85_v8  ;;  %v90_v26 = vsub.f32 %v88_v17, %v89_v23 }
  0x18   :  { %186 = vmatpush.msra.mxu3 %v85_v8  ;;  %v124_v28 = vand.u32 4294901760, %v123_v22  ;;  %v130_v30 = vand.u32 4294901760, %v129_v27 }
  0x19   :  { %209 = vmatpush.msrb.mxu0 %v110_v15  ;;  %113 = vmatpush.msra.mxu1 %v112_v24  ;;  %v91_v29 = vand.u32 4294901760, %v90_v26 }
  0x1a   :  { %160 = vmatpush.msra.mxu2 %v127_v14  ;;  %190 = vmatmul.f32.vlgmr.msra.gmra.mxu3 %v89_v23 }
  0x1b   :  { %163 = vmatmul.f32.vlgmr.msra.gmra.mxu2 %v88_v17  ;;  %119 = vmatpush.msra.mxu1 %v118_v25 }
  0x1c   :  { %92 = vmatmul.f32.vlgmr.msra.gmra.mxu0 %v91_v29 }
  0x1d   :  { %213 = vmatpush.msrb.mxu0 %v116_v16  ;;  %125 = vmatpush.msra.mxu1 %v124_v28 }
  0x1f   :  { %217 = vmatpush.msrb.mxu0 %v122_v18  ;;  %131 = vmatpush.msra.mxu1 %v130_v30 }
  0x20   :  { %133 = vmatmul.f32.vlgmr.msra.gmra.mxu1 %v87_v13 }
  0x21   :  { %221 = vmatpush.msrb.mxu0 %v128_v19  ;;  %240 = vmatpush.msrb.mxu1 %v79_v3 }
  0x23   :  { %242 = vmatpush.msrb.mxu1 %v81_v4 }
  0x24   :  { %223 = vmatmul.f32.vlgmr.msrb.gmra.mxu0 %v87_v13 }
  0x25   :  { %244 = vmatpush.msrb.mxu1 %v83_v5  ;;  %v312_v5 = vld [vmem:[#allocation7 + $0x2] ss:$0 sm:$0xff] }
  0x27   :  { %246 = vmatpush.msrb.mxu1 %v85_v8 }
  0x28   :  { %248 = vmatmul.f32.vlgmr.msrb.gmra.mxu1 %v87_v13 }
  0x99   :  { %v93_v31 = vpop.f32.mrf.mxu0 }
  0x9d   :  { %v134_v32 = vpop.f32.mrf.mxu1  ;;  %v191_v35 = vpop.f32.mrf.mxu3 }
  0x9e   :  { %v164_v33 = vpop.f32.mrf.mxu2  ;;  %v135_v34 = vadd.f32 %v134_v32, %v93_v31 }
  0xa0   :  { %v165_v36 = vadd.f32 %v164_v33, %v135_v34 }
  0xa1   :  { %v224_v37 = vpop.f32.mrf.mxu0 }
  0xa2   :  { %v192_v38 = vadd.f32 %v191_v35, %v165_v36 }
  0xa4   :  { %v225_v39 = vadd.f32 %v224_v37, %v192_v38 }
  0xa5   :  { %v249_v40 = vpop.f32.mrf.mxu1 }
  0xa6   :  { %v250_v41 = vadd.f32 %v249_v40, %v225_v39 }
  0xa8   :  { %v254_v42 = vrot.slane %v250_v41, 4 }
  0xaa   :  { %v255_v43 = vadd.f32 %v254_v42, %v250_v41 }
  0xac   :  { %v256_v44 = vrot.slane %v255_v43, 2 }
  0xae   :  { %v257_v45 = vadd.f32 %v256_v44, %v255_v43 }
  0xb0   :  { %v258_v46 = vrot.slane %v257_v45, 1 }
  0xb2   :  { %v259_v47 = vadd.f32 %v258_v46, %v257_v45 }
  0xb4   :  { %v260_v48 = vmul.f32 0.125, %v259_v47 }
  0xb6   :  { %v261_v49 = vsub.f32 %v250_v41, %v260_v48 }
  0xb8   :  { %v262_v50 = vmul.f32 %v261_v49, %v261_v49 }
  0xba   :  { %v263_v51 = vrot.slane %v262_v50, 4 }
  0xbc   :  { %v264_v52 = vadd.f32 %v263_v51, %v262_v50 }
  0xbe   :  { %v265_v53 = vrot.slane %v264_v52, 2 }
  0xc0   :  { %v266_v54 = vadd.f32 %v265_v53, %v264_v52 }
  0xc2   :  { %v267_v55 = vrot.slane %v266_v54, 1 }
  0xc4   :  { %v268_v56 = vadd.f32 %v267_v55, %v266_v54 }
  0xc6   :  { %v269_v57 = vmul.f32 0.125, %v268_v56 }
  0xc8   :  { %v270_v58 = vadd.f32 1e-05, %v269_v57 }
  0xca   :  { %313 = vrsqrt.f32 %v270_v58  ;;  %vm277_vm2 = vweird.f32 %v270_v58 }
  0xd0   :  { %v314_v59 = vpop.eup %313 }
  0xd1   :  { %v272_v60 = vmul.f32 %v314_v59, %v270_v58  ;;  %vm278_vm1 = vweird.f32 %v314_v59 }
  0xd2   :  { %vm279_vm3 = vmor %vm277_vm2, %vm278_vm1 }
  0xd3   :  { %v273_v61 = vmul.f32 %v314_v59, %v272_v60 }
  0xd5   :  { %v274_v62 = vmul.f32 0.5, %v273_v61 }
  0xd7   :  { %v275_v63 = vsub.f32 1.5, %v274_v62 }
  0xd9   :  { %v276_v1 = vmul.f32 %v314_v59, %v275_v63 }
  0xdb   :  { %v280_v2 = vsel %vm279_vm3, %v314_v59, %v276_v1 }
  0xdc   :  { %v281_v3 = vmul.f32 %v280_v2, %v252_v0 }
  0xde   :  { %v282_v4 = vperm.slane %v281_v3, 0 }
  0xe0   :  { %v283_v6 = vmul.f32 %v282_v4, %v261_v49 }
  0xe2   :  { %v285_v7 = vadd.f32 %v312_v5, %v283_v6 }
  0xe4   :  { %v286_v8 = vmax.f32 %v285_v7, 0.0 }
  0xe6   :  { %287 = vst [vmem:[#allocation8] sm:$0xff] %v286_v8 }
  0xe7   :  { %298 = dma.vmem_to_hbm [thread:$0]  %s294_s2, 128, %s296_s30, [#allocation4]  }
  0xe8   :  { %415 = dma.done.wait [#allocation4], 128  }
  0xe9   :  { %416 = vsyncadd [#allocation4], 4294967168 }
  0xea   :  { %303 = vsyncpa [#allocation3], 1 }
  0xeb   :  { %304 = vsyncpa [#allocation6], 1 }
  0xec   :  { %305 = vsyncpa [#allocation4], 1 }

</bundles_post_ra>
